<compile_context>
chip_gen: v5e
topology: v5e:2x2
jax: 0.10.0
libtpu: 0.0.40
codegen_flags: <defaults>
</compile_context>

<pallas_src>
import jax
import jax.numpy as jnp
from jax.experimental import pallas as pl
from jax.experimental.pallas import tpu as pltpu

_LANES = 128          # TPU lane width: fast (last) axis of every vreg.
_TILE_ROWS = 2048     # 2048 * 128 * 4B = 1 MiB per f32 block (x2 buffers x in/out ~ 4 MiB).


def _copy_kernel(x_ref, o_ref):
    # Identity copy of one block.  No arithmetic exists in the original
    # module; all real work is the software-pipelined DMA around this.
    o_ref[...] = x_ref[...]


def _copy_call(x2d, tile_rows, bytes_accessed):
    rows, cols = x2d.shape
    grid = (pl.cdiv(rows, tile_rows),)
    return pl.pallas_call(
        _copy_kernel,
        out_shape=jax.ShapeDtypeStruct((rows, cols), x2d.dtype),
        grid=grid,
        in_specs=[pl.BlockSpec((tile_rows, cols), lambda i: (i, 0))],
        out_specs=pl.BlockSpec((tile_rows, cols), lambda i: (i, 0)),
        # Identity copy: let XLA donate / reuse the input buffer when possible.
        input_output_aliases={0: 0},
        compiler_params=pltpu.CompilerParams(
            # "parallel" lets v7x shard the row axis across its 2 TensorCores.
            dimension_semantics=("parallel",),
        ),
        cost_estimate=pl.CostEstimate(
            flops=0,
            transcendentals=0,
            bytes_accessed=bytes_accessed,
        ),
    )(x2d)


def vec2vol(x: jax.Array) -> jax.Array:
    """x: (N, C)  ->  (N, C, 1, 1)  (matches torch unsqueeze(2).unsqueeze(3))."""
    n, c = x.shape
    total = n * c
    itemsize = jnp.dtype(x.dtype).itemsize
    bytes_accessed = 2 * total * itemsize

    if total % _LANES == 0:
        # --- Lane-dense path: flatten to (rows, 128), tile the row axis. ----
        rows = total // _LANES
        x2d = x.reshape(rows, _LANES)                 # metadata-only reshape
        # Whole array if small (block == full dims satisfies the (8,128) rule
        # for any rows), otherwise 8-aligned ~1 MiB tiles.
        tile_rows = rows if rows <= _TILE_ROWS else _TILE_ROWS
        copied = _copy_call(x2d, tile_rows, bytes_accessed)
    else:
        # --- Odd sizes (tiny latent batches): single full-array block. ------
        # No padding / slicing: that would add an extra HBM round-trip just to
        # make the layout pretty, which costs more than the masked stores on a
        # shape this small.
        copied = _copy_call(x, n, bytes_accessed)

    # --- Back to the module's output layout (pure metadata). ----------------
    return copied.reshape(n, c, 1, 1)


if __name__ == "__main__":
    key = jax.random.PRNGKey(0)
    # Small shape consistent with the module: a batch of latent vectors.
    N, C = 2, 32
    x = jax.random.normal(key, (N, C), dtype=jnp.float32)

    out = vec2vol(x)
    jax.block_until_ready(out)

    # Sanity checks against the reference semantics.
    assert out.shape == (N, C, 1, 1), out.shape
    assert out.dtype == x.dtype
    assert bool(jnp.all(out[:, :, 0, 0] == x))

    # Also exercise the non-128-multiple fallback path once.
    x_odd = jax.random.normal(key, (3, 5), dtype=jnp.float32)
    out_odd = vec2vol(x_odd)
    jax.block_until_ready(out_odd)
    assert out_odd.shape == (3, 5, 1, 1)
    assert bool(jnp.all(out_odd[:, :, 0, 0] == x_odd))

    print("KERNEL_OK")
</pallas_src>

<mosaic_0001>
module attributes {stable_mosaic.version = 11 : i64} {
  func.func @_copy_kernel(%arg0: i32, %arg1: memref<2x32xf32, #tpu.memory_space<vmem>>, %arg2: memref<2x32xf32, #tpu.memory_space<vmem>>) attributes {dimension_semantics = [#tpu.dimension_semantics<parallel>], iteration_bounds = array<i64: 1>, scalar_prefetch = 0 : i64, scratch_operands = 0 : i64, tpu.core_type = #tpu.core_type<tc>, window_params = [{transform_indices = @transform_0, window_bounds = array<i64: 2, 32>}, {transform_indices = @transform_1, window_bounds = array<i64: 2, 32>}]} {
    %c0 = arith.constant 0 : index
    %c0_0 = arith.constant 0 : index
    %0 = vector.load %arg1[%c0, %c0_0] : memref<2x32xf32, #tpu.memory_space<vmem>>, vector<2x32xf32>
    %c0_1 = arith.constant 0 : index
    %c0_2 = arith.constant 0 : index
    %1 = vector.load %arg2[%c0_1, %c0_2] : memref<2x32xf32, #tpu.memory_space<vmem>>, vector<2x32xf32>
    tpu.vector_store %arg2[%c0_1, %c0_2], %0 {strides = array<i32>} : memref<2x32xf32, #tpu.memory_space<vmem>>, vector<2x32xf32>,
    return
  }
  func.func @transform_0(%arg0: i32) -> (i32, i32) {
    %c0_i32 = arith.constant 0 : i32
    %c0_i32_0 = arith.constant 0 : i32
    return %arg0, %c0_i32 : i32, i32
  }
  func.func @transform_1(%arg0: i32) -> (i32, i32) {
    %c0_i32 = arith.constant 0 : i32
    %c0_i32_0 = arith.constant 0 : i32
    return %arg0, %c0_i32 : i32, i32
  }
}

</mosaic_0001>

<bundles_post_ra>
// kernel: tpu_custom_call.1
= control target key start
LH: loop header
LB: loop body
LE: loop exit
PB: predicated region body
PF: predicated region fallthrough
CT: control target
= control target key end

     0   :  { %6 = vsyncpa [#allocation3], 0  ;;  %s115_s0 = inlined_call_operand.hbm [shape: f32[2,32], index: 0, kind: input, shape index: {}, may-alias: {0,1}]   ;;  %s116_s1 = inlined_call_operand.hbm [shape: f32[2,32], index: 1, kind: output, shape index: {}, may-alias: {0,1}]  }
   0x1   :  { %7 = vsyncpa [#allocation4], 0  ;;  %s13_s8 = sshll.u32 %s115_s0, 4  ;;  %s97_s9 = smov [#allocation2]   ;;  %s14_s8 = int_to_ptr.hbm [resolvable:$true] %s13_s8 }
   0x2   :  { %s15_s10 = sshll.u32 %s97_s9, 4  ;;  %s16_s10 = int_to_ptr.vmem [resolvable:$true] %s15_s10 }
   0x3   :  { %18 = dma.hbm_to_vmem [thread:$0]  %s14_s8, 32, %s16_s10, [#allocation3]  }
   0x4   :  { %93 = dma.done.wait [#allocation3], 32  }
   0x5   :  { %94 = vsyncadd [#allocation3], 4294967264  ;;  %s98_s11 = smov [#allocation5]   ;;  %s33_s15 = sshll.u32 %s116_s1, 4  ;;  %vm24_vm0 = vcmask 254976   ;;  %s34_s15 = int_to_ptr.hbm [resolvable:$true] %s33_s15 }
   0x6   :  { %s31_s12 = sshll.u32 %s98_s11, 4  ;;  %v23_v0 = vld [vmem:[#allocation2] sm:$0x3]  ;;  %s32_s12 = int_to_ptr.vmem [resolvable:$true] %s31_s12 }
   0x7   :  { %25 = vst.msk [vmem:[#allocation5] sm:$0x3] %vm24_vm0, %v23_v0 }
   0x8   :  { %36 = dma.vmem_to_hbm [thread:$0]  %s32_s12, 32, %s34_s15, [#allocation4]  }
   0x9   :  { %95 = dma.done.wait [#allocation4], 32  }
   0xa   :  { %96 = vsyncadd [#allocation4], 4294967264 }
   0xb   :  { %41 = vsyncpa [#allocation3], 1 }
   0xc   :  { %42 = vsyncpa [#allocation4], 1 }

</bundles_post_ra>
